<compile_context>
chip_gen: v7x
topology: tpu7x:2x2x1
jax: 0.10.0
libtpu: 0.0.40
codegen_flags: <defaults>
</compile_context>

<pallas_src>
import math
from functools import lru_cache, partial

import numpy as np
import jax
import jax.numpy as jnp
from jax.experimental import pallas as pl
from jax.experimental.pallas import tpu as pltpu

_VMEM_LIMIT_BYTES = 48 * 1024 * 1024  # explicit scoped-VMEM limit (v5e/v6e/v7x safe)


def _round_up(x, m):
    return (x + m - 1) // m * m


# ----------------------------------------------------------------------------
# Pass 1: centered moments of the conv INPUT, tiled over M = B*H*W.
#   gram  = sum_m (x_m - mu0)(x_m - mu0)^T    (Cin, Cin)   [MXU]
#   sums  = sum_m (x_m - mu0)                 (1,  Cin)    [ones @ x, MXU]
# BN statistics of y = x @ W are recovered from these in the wrapper.
# ----------------------------------------------------------------------------
def _moments_kernel(x_ref, mu0_ref, gram_ref, sum_ref, *, m_total, tm):
    step = pl.program_id(0)

    @pl.when(step == 0)
    def _init():
        gram_ref[...] = jnp.zeros_like(gram_ref)
        sum_ref[...] = jnp.zeros_like(sum_ref)

    xc = x_ref[...] - mu0_ref[...]                       # center (VPU)
    # Mask the padded rows of the last (partial) tile.
    row = jax.lax.broadcasted_iota(jnp.int32, xc.shape, 0)
    xc = jnp.where(row < (m_total - step * tm), xc, 0.0)

    # Gram and column sums, both on the MXU (no cross-sublane XLU reductions).
    gram_ref[...] += jax.lax.dot_general(
        xc, xc, (((0,), (0,)), ((), ())), preferred_element_type=jnp.float32)
    ones = jnp.ones((1, tm), jnp.float32)
    sum_ref[...] += jnp.dot(ones, xc, preferred_element_type=jnp.float32)


def input_moments(x2d, mu0, *, m_tile=None):
    m, cin = x2d.shape
    if m_tile is None:
        # Byte-aware tile: ~2 MiB per input buffer, multiple of 8 rows.
        tm = max(8, (2 * 1024 * 1024 // (cin * 4)) // 8 * 8)
        tm = min(tm, _round_up(m, 8))
    else:
        tm = m_tile
    assert tm % 8 == 0 or tm == m, (m, tm)

    kernel = partial(_moments_kernel, m_total=m, tm=tm)
    return pl.pallas_call(
        kernel,
        out_shape=(jax.ShapeDtypeStruct((cin, cin), jnp.float32),
                   jax.ShapeDtypeStruct((1, cin), jnp.float32)),
        grid=(pl.cdiv(m, tm),),
        in_specs=[
            pl.BlockSpec((tm, cin), lambda i: (i, 0)),
            pl.BlockSpec((1, cin), lambda i: (0, 0)),
        ],
        out_specs=(
            pl.BlockSpec((cin, cin), lambda i: (0, 0)),
            pl.BlockSpec((1, cin), lambda i: (0, 0)),
        ),
        compiler_params=pltpu.CompilerParams(
            dimension_semantics=("arbitrary",),
            vmem_limit_bytes=_VMEM_LIMIT_BYTES),
    )(x2d, mu0)


# ----------------------------------------------------------------------------
# Pass 2a: per-image fused 1x1 conv + folded-BN + ReLU, channel-major.
#   xt_ref: (Cin, H*W) bf16, w_ref: (Cout, Cin) bf16 (= (W*scale)^T),
#   shift_ref: (Cout, 1) f32, out: (Cout, H*W).
# ----------------------------------------------------------------------------
def _conv_bn_relu_kernel(xt_ref, w_ref, shift_ref, y_ref):
    y = jnp.dot(w_ref[...], xt_ref[...], preferred_element_type=jnp.float32)
    y_ref[...] = jnp.maximum(y + shift_ref[...], 0.0).astype(y_ref.dtype)


def conv_bn_relu(xt, w_st, shift_col, *, out_dtype):
    b, cin, hw = xt.shape
    cout = w_st.shape[0]
    return pl.pallas_call(
        _conv_bn_relu_kernel,
        out_shape=jax.ShapeDtypeStruct((b, cout, hw), out_dtype),
        grid=(b,),
        in_specs=[
            pl.BlockSpec((None, cin, hw), lambda i: (i, 0, 0)),
            pl.BlockSpec((cout, cin), lambda i: (0, 0)),
            pl.BlockSpec((cout, 1), lambda i: (0, 0)),
        ],
        out_specs=pl.BlockSpec((None, cout, hw), lambda i: (i, 0, 0)),
        compiler_params=pltpu.CompilerParams(
            dimension_semantics=("parallel",),
            vmem_limit_bytes=_VMEM_LIMIT_BYTES),
    )(xt, w_st, shift_col)


# ----------------------------------------------------------------------------
# Pass 2b: separable bilinear x2 upsample (align_corners=True), per image.
#   y_ref:  (Cout, H, W)    bf16   (post conv/BN/ReLU, channel-major)
#   utb_ref:(Cout, W, W2)   bf16   (U^T broadcast over channels)
#   ub_ref: (Cout, H2, H)   bf16   (U broadcast over channels)
#   o_ref:  (Cout, H2, W2)  f32    -> already NCHW, no transposes/reshapes.
# Both einsums are the standard batched-matmul pattern ('bqk,bkd->bqd').
# ----------------------------------------------------------------------------
def _upsample_kernel(y_ref, utb_ref, ub_ref, o_ref):
    a = jnp.einsum('chw,cwq->chq', y_ref[...], utb_ref[...],
                   preferred_element_type=jnp.float32)        # W-axis interp
    o_ref[...] = jnp.einsum('cph,chq->cpq', ub_ref[...],
                            a.astype(jnp.bfloat16),
                            preferred_element_type=jnp.float32)  # H-axis interp


def bilinear_upsample(y4, utb, ub):
    b, cout, h, w = y4.shape
    h2 = ub.shape[1]
    w2 = utb.shape[2]
    return pl.pallas_call(
        _upsample_kernel,
        out_shape=jax.ShapeDtypeStruct((b, cout, h2, w2), jnp.float32),
        grid=(b,),
        in_specs=[
            pl.BlockSpec((None, cout, h, w), lambda i: (i, 0, 0, 0)),
            pl.BlockSpec((cout, w, w2), lambda i: (0, 0, 0)),
            pl.BlockSpec((cout, h2, h), lambda i: (0, 0, 0)),
        ],
        out_specs=pl.BlockSpec((None, cout, h2, w2), lambda i: (i, 0, 0, 0)),
        compiler_params=pltpu.CompilerParams(
            dimension_semantics=("parallel",),
            vmem_limit_bytes=_VMEM_LIMIT_BYTES),
    )(y4, utb, ub)


def make_bilinear_matrix(h_in, h_out):
    """1-D interpolation matrix for mode='bilinear', align_corners=True."""
    u = np.zeros((h_out, h_in), dtype=np.float32)
    if h_in == 1 or h_out == 1:
        u[:, 0] = 1.0
        return u
    for q in range(h_out):
        src = q * (h_in - 1) / (h_out - 1)
        i0 = min(int(np.floor(src)), h_in - 1)
        i1 = min(i0 + 1, h_in - 1)
        frac = src - i0
        u[q, i0] += 1.0 - frac
        u[q, i1] += frac
    return u


@lru_cache(maxsize=None)
def _interp_constants(h, cout):
    """Cached (per H, Cout) bf16 interpolation operands for pass 2b."""
    u = make_bilinear_matrix(h, 2 * h)                       # (H2, H)
    utb = jnp.asarray(np.broadcast_to(u.T[None], (cout, h, 2 * h)),
                      dtype=jnp.bfloat16)                    # (Cout, W, W2)
    ub = jnp.asarray(np.broadcast_to(u[None], (cout, 2 * h, h)),
                     dtype=jnp.bfloat16)                     # (Cout, H2, H)
    return utb, ub


# ----------------------------------------------------------------------------
# T2F forward wrapper.
# ----------------------------------------------------------------------------
def t2f_forward(x_tokens, conv_w, bn_gamma, bn_beta, *, downsample,
                eps=1e-5, m_tile=None):
    B, N, Cin = x_tokens.shape
    Cout = conv_w.shape[1]
    H = int(round(math.sqrt(N - 1)))
    assert H * H == N - 1, "token count (minus cls) must be a perfect square"
    HW = H * H
    M = B * HW

    # tokens[:, 1:, :] read row-major is exactly the NCHW plane order per (h,w).
    x_p = x_tokens[:, 1:, :]                                  # (B, HW, Cin)
    x2d = x_p.reshape(M, Cin).astype(jnp.float32)             # (M, Cin)

    # --- Pass 1: centered input moments (f32, exact BN batch statistics). ---
    n0 = min(1024, M)
    mu0 = jnp.mean(x2d[:n0], axis=0, keepdims=True)           # shift for numerics
    gram_c, sum_c = input_moments(x2d, mu0, m_tile=m_tile)

    # Recover BN batch mean/var of y = x @ W from the input moments.
    w_f32 = conv_w.astype(jnp.float32)                        # (Cin, Cout)
    sum_yc = sum_c @ w_f32                                    # (1, Cout), centered
    mean_y = mu0 @ w_f32 + sum_yc / M
    sumsq_yc = jnp.sum(w_f32 * (gram_c @ w_f32), axis=0, keepdims=True)
    var_y = jnp.maximum(sumsq_yc / M - (sum_yc / M) ** 2, 0.0)
    scale = bn_gamma.reshape(1, Cout).astype(jnp.float32) * jax.lax.rsqrt(var_y + eps)
    shift = bn_beta.reshape(1, Cout).astype(jnp.float32) - mean_y * scale

    # Fold the BN scale into the conv weight (bf16 MXU operands, f32 shift).
    w_st = (w_f32 * scale).T.astype(jnp.bfloat16)             # (Cout, Cin)
    shift_col = shift.reshape(Cout, 1).astype(jnp.float32)    # (Cout, 1)

    # Channel-major input for pass 2 (== torch.transpose(x, 1, 2)); bf16 halves
    # HBM traffic and feeds the MXU natively.
    xt = jnp.transpose(x_p, (0, 2, 1)).astype(jnp.bfloat16)   # (B, Cin, HW)

    if downsample:
        # No upsample: pass 2a's channel-major result is already NCHW.
        y = conv_bn_relu(xt, w_st, shift_col, out_dtype=jnp.float32)
        return y.reshape(B, Cout, H, H)

    y = conv_bn_relu(xt, w_st, shift_col, out_dtype=jnp.bfloat16)  # (B, Cout, HW)
    y4 = y.reshape(B, Cout, H, H)                              # free dim-split reshape
    utb, ub = _interp_constants(H, Cout)
    return bilinear_upsample(y4, utb, ub)                      # (B, Cout, 2H, 2H)


# ----------------------------------------------------------------------------
# Pure-JAX reference for a numerical sanity check.
# ----------------------------------------------------------------------------
def t2f_reference(x_tokens, conv_w, bn_gamma, bn_beta, *, downsample):
    B, N, C = x_tokens.shape
    cout = conv_w.shape[1]
    H = int(round(math.sqrt(N - 1)))
    x = x_tokens[:, 1:, :]
    x = jnp.transpose(x, (0, 2, 1)).reshape(B, C, H, H)        # NCHW
    y = jnp.einsum('bchw,cd->bdhw', x, conv_w)
    mean = jnp.mean(y, axis=(0, 2, 3), keepdims=True)
    var = jnp.mean((y - mean) ** 2, axis=(0, 2, 3), keepdims=True)
    y = (y - mean) * jax.lax.rsqrt(var + 1e-5)
    y = y * bn_gamma.reshape(1, cout, 1, 1) + bn_beta.reshape(1, cout, 1, 1)
    y = jnp.maximum(y, 0.0)
    if downsample:
        return y
    u = jnp.asarray(make_bilinear_matrix(H, 2 * H))
    return jnp.einsum('ph,bchw,qw->bcpq', u, y, u)


if __name__ == "__main__":
    # Small shapes: B=2, in_planes=4, out_planes=8, H=W=8 -> N = 1 + 64 = 65.
    B, in_planes, out_planes, H = 2, 4, 8, 8
    N = 1 + H * H

    key = jax.random.PRNGKey(0)
    k_x, k_w, k_g, k_b = jax.random.split(key, 4)

    x = jax.random.normal(k_x, (B, N, in_planes), dtype=jnp.float32)
    # Conv2d(in, out, 1, bias=False) weight (out, in, 1, 1) stored as (in, out).
    conv_w = 0.1 * jax.random.normal(k_w, (in_planes, out_planes), dtype=jnp.float32)
    bn_gamma = 1.0 + 0.1 * jax.random.normal(k_g, (out_planes,), dtype=jnp.float32)
    bn_beta = 0.05 * jax.random.normal(k_b, (out_planes,), dtype=jnp.float32)

    # m_tile=40 forces a multi-step stats reduction (grid=4) with a masked
    # partial tail tile (M=128 = 3*40 + 8), exercising the cdiv+mask path.
    out = t2f_forward(x, conv_w, bn_gamma, bn_beta, downsample=False, m_tile=40)
    out = jax.block_until_ready(out)
    assert out.shape == (B, out_planes, 2 * H, 2 * H), out.shape
    ref = t2f_reference(x, conv_w, bn_gamma, bn_beta, downsample=False)
    np.testing.assert_allclose(np.asarray(out), np.asarray(ref),
                               atol=2e-2, rtol=2e-2)

    # Downsample branch: no upsample, interpolation kernel skipped entirely.
    out_d = t2f_forward(x, conv_w, bn_gamma, bn_beta, downsample=True, m_tile=40)
    out_d = jax.block_until_ready(out_d)
    assert out_d.shape == (B, out_planes, H, H), out_d.shape
    ref_d = t2f_reference(x, conv_w, bn_gamma, bn_beta, downsample=True)
    np.testing.assert_allclose(np.asarray(out_d), np.asarray(ref_d),
                               atol=2e-2, rtol=2e-2)

    print("KERNEL_OK")
</pallas_src>

<mosaic_0001>
module attributes {stable_mosaic.version = 11 : i64} {
  func.func @_moments_kernel(%arg0: i32, %arg1: memref<40x4xf32, #tpu.memory_space<vmem>>, %arg2: memref<1x4xf32, #tpu.memory_space<vmem>>, %arg3: memref<4x4xf32, #tpu.memory_space<vmem>>, %arg4: memref<1x4xf32, #tpu.memory_space<vmem>>) attributes {dimension_semantics = [#tpu.dimension_semantics<arbitrary>], iteration_bounds = array<i64: 4>, scalar_prefetch = 0 : i64, scratch_operands = 0 : i64, tpu.core_type = #tpu.core_type<tc>, window_params = [{transform_indices = @transform_0, window_bounds = array<i64: 40, 4>}, {pipeline_mode = #tpu.pipeline_mode<synchronous>, transform_indices = @transform_1, window_bounds = array<i64: 1, 4>}, {pipeline_mode = #tpu.pipeline_mode<synchronous>, transform_indices = @transform_2, window_bounds = array<i64: 4, 4>}, {pipeline_mode = #tpu.pipeline_mode<synchronous>, transform_indices = @transform_3, window_bounds = array<i64: 1, 4>}]} {
    %c0_i32 = arith.constant 0 : i32
    %0 = arith.cmpi eq, %arg0, %c0_i32 : i32
    %1 = arith.extui %0 : i1 to i32
    %c0_i32_0 = arith.constant 0 : i32
    %2 = arith.cmpi ne, %1, %c0_i32_0 : i32
    scf.if %2 {
      %cst_15 = arith.constant 0.000000e+00 : f32
      %23 = vector.broadcast %cst_15 : f32 to vector<4x4xf32>
      %c0_16 = arith.constant 0 : index
      %c0_17 = arith.constant 0 : index
      %24 = vector.load %arg3[%c0_16, %c0_17] : memref<4x4xf32, #tpu.memory_space<vmem>>, vector<4x4xf32>
      tpu.vector_store %arg3[%c0_16, %c0_17], %23 {strides = array<i32>} : memref<4x4xf32, #tpu.memory_space<vmem>>, vector<4x4xf32>,
      %cst_18 = arith.constant 0.000000e+00 : f32
      %25 = vector.broadcast %cst_18 : f32 to vector<1x4xf32>
      %c0_19 = arith.constant 0 : index
      %c0_20 = arith.constant 0 : index
      %26 = vector.load %arg4[%c0_19, %c0_20] : memref<1x4xf32, #tpu.memory_space<vmem>>, vector<1x4xf32>
      tpu.vector_store %arg4[%c0_19, %c0_20], %25 {strides = array<i32>} : memref<1x4xf32, #tpu.memory_space<vmem>>, vector<1x4xf32>,
    } else {
    }
    %c0 = arith.constant 0 : index
    %c0_1 = arith.constant 0 : index
    %3 = vector.load %arg1[%c0, %c0_1] : memref<40x4xf32, #tpu.memory_space<vmem>>, vector<40x4xf32>
    %c0_2 = arith.constant 0 : index
    %c0_3 = arith.constant 0 : index
    %4 = vector.load %arg2[%c0_2, %c0_3] : memref<1x4xf32, #tpu.memory_space<vmem>>, vector<1x4xf32>
    %5 = vector.broadcast %4 : vector<1x4xf32> to vector<40x4xf32>
    %6 = arith.subf %3, %5 : vector<40x4xf32>
    %7 = tpu.iota {dimensions = array<i32: 0>} : vector<40x4xi32>
    %c40_i32 = arith.constant 40 : i32
    %8 = arith.muli %arg0, %c40_i32 : i32
    %c128_i32 = arith.constant 128 : i32
    %9 = arith.subi %c128_i32, %8 : i32
    %10 = vector.broadcast %9 : i32 to vector<40x4xi32>
    %11 = arith.cmpi slt, %7, %10 : vector<40x4xi32>
    %cst = arith.constant 0.000000e+00 : f32
    %12 = vector.broadcast %cst : f32 to vector<40x4xf32>
    %13 = arith.select %11, %6, %12 : vector<40x4xi1>, vector<40x4xf32>
    %c0_4 = arith.constant 0 : index
    %c0_5 = arith.constant 0 : index
    %14 = vector.load %arg3[%c0_4, %c0_5] : memref<4x4xf32, #tpu.memory_space<vmem>>, vector<4x4xf32>
    %cst_6 = arith.constant dense<0.000000e+00> : vector<4x4xf32>
    %15 = tpu.matmul %13, %13, %cst_6 {dimension_numbers = #tpu.dot_dimension_numbers<[0], [0], [1], [1], [0, 1, 1, 1], [], []>} : vector<40x4xf32>, vector<40x4xf32>, vector<4x4xf32> -> vector<4x4xf32>
    %16 = arith.addf %14, %15 : vector<4x4xf32>
    %c0_7 = arith.constant 0 : index
    %c0_8 = arith.constant 0 : index
    %17 = vector.load %arg3[%c0_7, %c0_8] : memref<4x4xf32, #tpu.memory_space<vmem>>, vector<4x4xf32>
    tpu.vector_store %arg3[%c0_7, %c0_8], %16 {strides = array<i32>} : memref<4x4xf32, #tpu.memory_space<vmem>>, vector<4x4xf32>,
    %cst_9 = arith.constant 1.000000e+00 : f32
    %18 = vector.broadcast %cst_9 : f32 to vector<1x40xf32>
    %c0_10 = arith.constant 0 : index
    %c0_11 = arith.constant 0 : index
    %19 = vector.load %arg4[%c0_10, %c0_11] : memref<1x4xf32, #tpu.memory_space<vmem>>, vector<1x4xf32>
    %cst_12 = arith.constant dense<0.000000e+00> : vector<1x4xf32>
    %20 = tpu.matmul %18, %13, %cst_12 {dimension_numbers = #tpu.dot_dimension_numbers<[1], [0], [0], [1], [0, 0, 1, 1], [], []>} : vector<1x40xf32>, vector<40x4xf32>, vector<1x4xf32> -> vector<1x4xf32>
    %21 = arith.addf %19, %20 : vector<1x4xf32>
    %c0_13 = arith.constant 0 : index
    %c0_14 = arith.constant 0 : index
    %22 = vector.load %arg4[%c0_13, %c0_14] : memref<1x4xf32, #tpu.memory_space<vmem>>, vector<1x4xf32>
    tpu.vector_store %arg4[%c0_13, %c0_14], %21 {strides = array<i32>} : memref<1x4xf32, #tpu.memory_space<vmem>>, vector<1x4xf32>,
    return
  }
  func.func @transform_0(%arg0: i32) -> (i32, i32) {
    %c0_i32 = arith.constant 0 : i32
    %c0_i32_0 = arith.constant 0 : i32
    return %arg0, %c0_i32 : i32, i32
  }
  func.func @transform_1(%arg0: i32) -> (i32, i32) {
    %c0_i32 = arith.constant 0 : i32
    %c0_i32_0 = arith.constant 0 : i32
    %c0_i32_1 = arith.constant 0 : i32
    return %c0_i32, %c0_i32_0 : i32, i32
  }
  func.func @transform_2(%arg0: i32) -> (i32, i32) {
    %c0_i32 = arith.constant 0 : i32
    %c0_i32_0 = arith.constant 0 : i32
    %c0_i32_1 = arith.constant 0 : i32
    return %c0_i32, %c0_i32_0 : i32, i32
  }
  func.func @transform_3(%arg0: i32) -> (i32, i32) {
    %c0_i32 = arith.constant 0 : i32
    %c0_i32_0 = arith.constant 0 : i32
    %c0_i32_1 = arith.constant 0 : i32
    return %c0_i32, %c0_i32_0 : i32, i32
  }
}

</mosaic_0001>

<bundles_post_ra>
// kernel: tpu_custom_call.1
= control target key start
LH: loop header
LB: loop body
LE: loop exit
PB: predicated region body
PF: predicated region fallthrough
CT: control target
= control target key end

     0   :  { %9 = vsyncpa [#allocation3], 0  ;;  %s752_s0 = inlined_call_operand.vmem [shape: f32[128,4], index: 0, kind: input, shape index: {}]   ;;  %s753_s1 = inlined_call_operand.vmem [shape: f32[1,4], index: 1, kind: input, shape index: {}]   ;;  %s754_s2 = inlined_call_operand.hbm [shape: f32[4,4], index: 2, kind: output, shape index: {0}]   ;;  %s755_s3 = inlined_call_operand.hbm [shape: f32[1,4], index: 3, kind: output, shape index: {1}]  }
   0x1   :  { %10 = vsyncpa [#allocation5], 0  ;;  %s678_s12 = smov 0  }
   0x2 LB: > { %s684_s13 = sadd.s32 4294967295, %s649_s12   ;;  %p480_p0 = scmp.ge.s32.totalorder %s649_s12, 1  ;;  %s649_s12 = sphi %s678_s12, %s16_s12  }
   0x3   : > { %p141_p1 = scmp.lt.s32.totalorder %s649_s12, 5 }
   0x5   : > { %p142_p2 = pnand %p480_p0, %p141_p1 }
   0x6   : > { %s164_s14 = smul.u32 (!%p142_p2), 5, %s684_s13  ;;  %p482_p4 = scmp.ne.s32.totalorder (!%p142_p2), %s684_s13, 0 }
   0x7   : > { %145 = sbr.rel (%p142_p2) target bundleno = 387 (0x183), region = 28 }
   0x8   : > { %p169_p3 = scmp.lt.s32.totalorder (!%p142_p2), %s164_s14, 15 }
   0xe   : > { %s757_s14 = smov (!%p169_p3, %s164_s14), 15  ;;  %181 = sbr.rel (%p482_p4) target bundleno = 21 (0x15), region = 32 }
   0xf   : > { %s481_s15 = sshll.u32 %s757_s14, 3  ;;  %vm182_vm0 = vcmask (!%p482_p4), 27648   ;;  %vm184_vm1 = vcmask (!%p482_p4), 24576   ;;  %v651_v0 = vmov (!%p482_p4), 0.0  }
  0x10   : > { %s692_s18 = scalar_lea.vmem %s752_s0, %s481_s15  ;;  %183 = vst.msk [vmem:[#allocation2] sm:$0xf] (!%p482_p4), %vm182_vm0, %v651_v0 }
  0x11   : > { %185 = vst.msk [vmem:[#allocation4] sm:$0x1] (!%p482_p4), %vm184_vm1, %v651_v0 }
  0x15 PF: > { %v186_v1 = vld [vmem:[%s692_s18] sm:$0xff]  ;;  %v203_v3 = vlaneseq  ;;  %s209_s21 = smul.u32 40, %s684_s13  ;;  %v187_v4 = vld [vmem:[%s692_s18 + $0x8] sm:$0xff]  ;;  %v652_v6 = vmov 0.0|0.0   ;;  %vm653_vm2 = vmmov 0   ;;  %v654_v8 = vmov 0.0  }
  0x16   : > { %v483_v2 = vld [vmem:[%s753_s1] ss:$0 sm:$0xff]  ;;  %548 = vmatprep.subr.bf16.mxu1 %v652_v6  ;;  %540 = vmatprep.subr.bf16.mxu0 %v652_v6  ;;  %v188_v12 = vld [vmem:[%s692_s18 + $0x10] sm:$0xff]  ;;  %v189_v14 = vld [vmem:[%s692_s18 + $0x18] sm:$0xff]  ;;  %vm255_vm9 = vcmask 326656   ;;  %v655_v27 = vmov 1.0  }
  0x17   : > { %v198_v5 = vsub.f32 %v186_v1, %v483_v2  ;;  %v204_v7 = vshrl.u32 %v203_v3, 7  ;;  %s210_s22 = ssub.s32 128, %s209_s21  ;;  %537 = vmatprep.mubr.msk.f32.mxu1 %vm653_vm2, %v654_v8  ;;  %524 = vmatprep.mubr.msk.f32.mxu0 %vm653_vm2, %v654_v8  ;;  %v199_v10 = vsub.f32 %v187_v4, %v483_v2  ;;  %v200_v19 = vsub.f32 %v188_v12, %v483_v2  ;;  %v190_v23 = vld [vmem:[%s692_s18 + $0x20] sm:$0xff]  ;;  %s656_s23 = smov [#allocation4]  }
  0x18   : > { %v211_v9 = vstv %s210_s22  ;;  %v201_v20 = vsub.f32 %v189_v14, %v483_v2  ;;  %v202_v26 = vsub.f32 %v190_v23, %v483_v2  ;;  %v332_v30 = vld [vmem:[#allocation4] sm:$0x1]  ;;  %s427_s24 = sshll.u32 %s656_s23, 4  ;;  %p564_p5 = scmp.eq.s32.totalorder %s684_s13, 3  ;;  %vm407_vm11 = vcmask 24576   ;;  %s428_s24 = int_to_ptr.vmem [resolvable:$true] %s427_s24 }
  0x19   : > { %vm212_vm3 = vcmp.lt.s32.totalorder %v204_v7, %v211_v9  ;;  %v205_v11 = vadd.s32 8, %v204_v7  ;;  %v206_v13 = vadd.s32 16, %v204_v7  ;;  %v207_v16 = vadd.s32 24, %v204_v7  ;;  %s583_s25 = scalar_lea.vmem %s428_s24, 16  ;;  %s589_s26 = scalar_lea.vmem %s428_s24, 32 }
  0x1a   : > { %v217_v15 = vsel %vm212_vm3, %v198_v5, 0.0  ;;  %v541_v17 = vpack.c.bf16 %v199_v10, %v198_v5  ;;  %v545_v21 = vpack.c.bf16 %v201_v20, %v200_v19  ;;  %v208_v24 = vadd.s32 32, %v204_v7  ;;  %p584_p6 = scmp.ne.s32.totalorder %s428_s24, %s583_s25  ;;  %p590_p9 = scmp.lt.s32.totalorder %s428_s24, %s428_s24 }
  0x1b   : > { %223 = vxpose.xlu0.b32.start [1/5] (short) (narrow) %v217_v15, 8  ;;  %vm213_vm4 = vcmp.lt.s32.totalorder %v205_v11, %v211_v9  ;;  %vm214_vm5 = vcmp.lt.s32.totalorder %v206_v13, %v211_v9  ;;  %vm215_vm7 = vcmp.lt.s32.totalorder %v207_v16, %v211_v9  ;;  %p591_p10 = scmp.lt.s32.totalorder %s589_s26, %s583_s25 }
  0x1c   : > { %v218_v18 = vsel %vm213_vm4, %v199_v10, 0.0  ;;  %vm542_vm6 = vmpackc.low %vm213_vm4, %vm212_vm3  ;;  %v219_v22 = vsel %vm214_vm5, %v200_v19, 0.0  ;;  %v220_v25 = vsel %vm215_vm7, %v201_v20, 0.0  ;;  %vm216_vm10 = vcmp.lt.s32.totalorder %v208_v24, %v211_v9  ;;  %p585_p7 = pnand %p584_p6, %p564_p5 }
  0x1d   : > { %551 = vmatpush3.bf16.msk.msra.mxu1 %vm542_vm6, %v541_v17  ;;  %543 = vmatpush3.bf16.msk.msra.mxu0 %vm542_vm6, %v541_v17  ;;  %vm546_vm8 = vmpackc.low %vm215_vm7, %vm214_vm5  ;;  %v221_v28 = vsel %vm216_vm10, %v202_v26, 0.0  ;;  %p592_p11 = por %p591_p10, %p590_p9 }
  0x1e   : > { %552 = vmatprep.subr.bf16.mxu1 %v652_v6  ;;  %544 = vmatprep.subr.bf16.mxu0 %v652_v6  ;;  %p586_p8 = pneg %p585_p7 }
  0x1f   : > { %224 = vxpose.xlu0.b32.cont [2/5] (short) (narrow) %v218_v18, 8 }
  0x20   : > { %p593_p12 = pnand %p592_p11, %p586_p8 }
  0x21   : > { %555 = vmatpush3.bf16.msk.msra.mxu1 %vm546_vm8, %v545_v21  ;;  %547 = vmatpush3.bf16.msk.msra.mxu0 %vm546_vm8, %v545_v21 }
  0x22   : > { %535 = vmatprep.subr.mxu1 %v654_v8  ;;  %522 = vmatprep.subr.mxu0 %v654_v8 }
  0x23   : > { %225 = vxpose.xlu0.b32.cont [3/5] (short) (narrow) %v219_v22, 8 }
  0x25   : > { %536 = vmatpush3.msk.msra.mxu1 %vm216_vm10, %v202_v26  ;;  %523 = vmatpush3.msk.msra.mxu0 %vm216_vm10, %v202_v26 }
  0x26   : > { %538 = vmatmul.mubr.msk.f32.vlgmr.msra.gmra.mrb[0].mxu1 %vm255_vm9, %v655_v27 }
  0x27   : > { %226 = vxpose.xlu0.b32.cont [4/5] (short) (narrow) %v220_v25, 8 }
  0x2b   : > { %227 = vxpose.xlu0.b32.end [5/5] (short) (narrow) %v221_v28, 8 }
  0x9b   : > { %v239_v29 = vpop.trf.xlu0 }
  0x9c   : > { %525 = vmatmul.mubr.msk.f32.vlgmr.msra.gmra.mrb[0].mxu0 %vm255_vm9, %v239_v29 }
  0xf9   : > { %v402_v31 = vpop.f32.mrb[0].mxu1 }
  0xfa   : > { %v406_v32 = vadd.f32 %v402_v31, %v332_v30  ;;  %v539_v33 = vpop.f32.mrb[1].mxu1 }
  0xfc   : > { %408 = vst.msk [vmem:[#allocation4] sm:$0x1] %vm407_vm11, %v406_v32 }
  0xfd   : > { %596 = shalt.err (!%p593_p12)
}
  0xfe   : > { %s597_s29 = scalar_lea.hbm %s755_s3, 16 }
  0xff   : > { %p598_p13 = scmp.ne.s32.totalorder %s755_s3, %s597_s29  ;;  %p603_p2 = scmp.lt.u32.totalorder %s597_s29, %s755_s3 }
 0x101   : > { %p599_p0 = pnand %p598_p13, %p564_p5 }
 0x103   : > { %p600_p1 = pneg %p599_p0 }
 0x105   : > { %p605_p3 = pnand %p603_p2, %p600_p1 }
 0x107   : > { %608 = shalt.err (!%p605_p3)
}
 0x108   : > { %559 = dma.vmem_to_hbm [thread:$0]  (%p564_p5), %s428_s24, 16, %s755_s3, [#allocation5]   ;;  %v222_v34 = vld [vmem:[#allocation2] sm:$0xf]  ;;  %vm330_vm12 = vcmask 27648  }
 0x109   : > { %s657_s9 = smov [#allocation2]  }
 0x10a   : > { %s416_s10 = sshll.u32 %s657_s9, 4  ;;  %s417_s10 = int_to_ptr.vmem [resolvable:$true] %s416_s10 }
 0x10b   : > { %s609_s11 = scalar_lea.vmem %s417_s10, 64  ;;  %p616_p8 = scmp.lt.s32.totalorder %s417_s10, %s417_s10 }
 0x10c   : > { %p610_p4 = scmp.ne.s32.totalorder %s417_s10, %s609_s11  ;;  %p617_p9 = scmp.lt.s32.totalorder %s609_s11, %s609_s11 }
 0x10e   : > { %p611_p6 = pnand %p610_p4, %p564_p5  ;;  %p618_p10 = por %p617_p9, %p616_p8 }
 0x110   : > { %p612_p7 = pneg %p611_p6 }
 0x112   : > { %p619_p11 = pnand %p618_p10, %p612_p7 }
 0x16f   : > { %v325_v35 = vpop.f32.mrb[0].mxu0 }
 0x170   : > { %v329_v36 = vadd.f32 %v325_v35, %v222_v34  ;;  %v526_v37 = vpop.f32.mrb[1].mxu0 }
 0x172   : > { %331 = vst.msk [vmem:[#allocation2] sm:$0xf] %vm330_vm12, %v329_v36 }
 0x173   : > { %622 = shalt.err (!%p619_p11)
}
 0x174   : > { %s623_s16 = scalar_lea.hbm %s754_s2, 64 }
 0x175   : > { %p624_p12 = scmp.ne.s32.totalorder %s754_s2, %s623_s16  ;;  %p629_p1 = scmp.lt.u32.totalorder %s623_s16, %s754_s2 }
 0x177   : > { %p625_p13 = pnand %p624_p12, %p564_p5 }
 0x179   : > { %p626_p0 = pneg %p625_p13 }
 0x17b   : > { %p631_p2 = pnand %p629_p1, %p626_p0 }
 0x17d   : > { %634 = shalt.err (!%p631_p2)
}
 0x17e   : > { %557 = dma.vmem_to_hbm [thread:$0]  (%p564_p5), %s417_s10, 64, %s754_s2, [#allocation3]  }
 0x17f   : > { %640 = dma.done.wait (%p564_p5), [#allocation3], 64  }
 0x180   : > { %642 = vsyncadd (%p564_p5), [#allocation3], 4294967232 }
 0x181   : > { %644 = dma.done.wait (%p564_p5), [#allocation5], 16  }
 0x182   : > { %646 = vsyncadd (%p564_p5), [#allocation5], 4294967280 }
 0x183 PF: > { %s16_s12 = sadd.s32 1, %s649_s12  }
 0x184   : > { %p13_p3 = scmp.ge.s32.totalorder %s16_s12, 6  }
 0x186   :  { %15 = sbr.rel (!%p13_p3) target bundleno = 2 (0x2), region = 67 }
 0x18d   :  { %444 = vsyncpa [#allocation3], 1 }
 0x18e   :  { %446 = vsyncpa [#allocation3 + $0x1], 1 }
 0x18f   :  { %447 = vsyncpa [#allocation5], 1 }

</bundles_post_ra>
